<compile_context>
chip_gen: v7x
topology: tpu7x:2x2x1
jax: 0.10.0
libtpu: 0.0.40
codegen_flags: <defaults>
</compile_context>

<pallas_src>
import jax
import jax.numpy as jnp
from jax.experimental import pallas as pl
from jax.experimental.pallas import tpu as pltpu

IN_FEATURES = 24
HIDDEN = 24
OUT_FEATURES = 1

# Default batch tile (lane axis). Tiny VMEM footprint even double-buffered:
# (24, 2048) f32 tile = 192 KiB, fits every generation's scoped VMEM easily.
DEFAULT_TILE_B = 2048


def _round_up(x: int, m: int) -> int:
    return ((x + m - 1) // m) * m


def _fcnn_kernel(xT_ref, w1_ref, b1_ref, w2_ref, b2_ref, oT_ref):
    # xT_ref: (24, TILE_B)   w1_ref: (24, 24)   b1_ref: (24, 1)
    # w2_ref: (1, 24)        b2_ref: (1, 1)     oT_ref: (1, TILE_B)
    xT = xT_ref[...]
    # Layer 1: hT = W1 @ xT + b1 (broadcast over lanes), ReLU. f32 MXU accumulate.
    hT = jnp.dot(w1_ref[...], xT, preferred_element_type=jnp.float32) + b1_ref[...]
    hT = jnp.maximum(hT, 0.0)
    # Layer 2: yT = W2 @ hT + b2 -> (1, TILE_B), lane-dense result and store.
    yT = jnp.dot(w2_ref[...], hT, preferred_element_type=jnp.float32) + b2_ref[...]
    oT_ref[...] = yT.astype(oT_ref.dtype)


def fcnn_forward(x, w1, b1, w2, b2, *, tile_b: int = DEFAULT_TILE_B):
    """x: (B, 24) f32, torch-layout params w1 (24,24), b1 (24,), w2 (1,24), b2 (1,).
    Returns (B, 1) f32, matching nn.Sequential(Linear, ReLU, Linear)."""
    B = x.shape[0]

    # Lane-aligned batch tile; shrink for small batches so the grid stays valid.
    tile_b = min(tile_b, _round_up(B, 128))
    Bp = _round_up(B, tile_b)

    # Transpose once in the wrapper so the kernel's lane axis is the batch.
    xT = x.T  # (24, B)
    if Bp != B:
        xT = jnp.pad(xT, ((0, 0), (0, Bp - B)))

    b1c = b1.reshape(HIDDEN, 1).astype(jnp.float32)
    b2c = b2.reshape(OUT_FEATURES, 1).astype(jnp.float32)

    grid = (Bp // tile_b,)

    yT = pl.pallas_call(
        _fcnn_kernel,
        out_shape=jax.ShapeDtypeStruct((OUT_FEATURES, Bp), jnp.float32),
        grid_spec=pltpu.PrefetchScalarGridSpec(
            num_scalar_prefetch=0,
            grid=grid,
            in_specs=[
                # xT tiled along the batch (lane) axis.
                pl.BlockSpec((IN_FEATURES, tile_b), lambda i: (0, i)),
                # Weights / biases: constant index_map -> VMEM-resident across grid.
                pl.BlockSpec((HIDDEN, IN_FEATURES), lambda i: (0, 0)),
                pl.BlockSpec((HIDDEN, 1), lambda i: (0, 0)),
                pl.BlockSpec((OUT_FEATURES, HIDDEN), lambda i: (0, 0)),
                pl.BlockSpec((OUT_FEATURES, 1), lambda i: (0, 0)),
            ],
            out_specs=pl.BlockSpec((OUT_FEATURES, tile_b), lambda i: (0, i)),
        ),
        compiler_params=pltpu.CompilerParams(
            # Batch tiles are independent -> shard across TCs on v7x megacore.
            dimension_semantics=("parallel",),
        ),
    )(xT, w1.astype(jnp.float32), b1c, w2.astype(jnp.float32), b2c)

    # Back to torch-style (B, 1) output.
    return yT[0, :B].reshape(B, OUT_FEATURES)


def init_params(key):
    """Deterministic init mimicking torch.nn.Linear's U(-1/sqrt(fan_in), 1/sqrt(fan_in)).
    Parameters are kept in the torch layout: weight (out, in), bias (out,)."""
    k1, k2, k3, k4 = jax.random.split(key, 4)
    bound1 = 1.0 / jnp.sqrt(IN_FEATURES)
    bound2 = 1.0 / jnp.sqrt(HIDDEN)
    w1 = jax.random.uniform(k1, (HIDDEN, IN_FEATURES), jnp.float32, -bound1, bound1)
    b1 = jax.random.uniform(k2, (HIDDEN,), jnp.float32, -bound1, bound1)
    w2 = jax.random.uniform(k3, (OUT_FEATURES, HIDDEN), jnp.float32, -bound2, bound2)
    b2 = jax.random.uniform(k4, (OUT_FEATURES,), jnp.float32, -bound2, bound2)
    return w1, b1, w2, b2


if __name__ == "__main__":
    key = jax.random.PRNGKey(0)
    kx, kp = jax.random.split(key)

    batch = 8
    x = jax.random.normal(kx, (batch, IN_FEATURES), jnp.float32)
    w1, b1, w2, b2 = init_params(kp)

    out = fcnn_forward(x, w1, b1, w2, b2)
    out = jax.block_until_ready(out)

    # Pure-JAX reference (torch semantics: y = relu(x @ W1^T + b1) @ W2^T + b2).
    h_ref = jnp.maximum(x @ w1.T + b1, 0.0)
    ref = h_ref @ w2.T + b2

    assert out.shape == (batch, OUT_FEATURES)
    assert jnp.allclose(out, ref, atol=1e-5, rtol=1e-5)

    print("KERNEL_OK")
</pallas_src>

<mosaic_0001>
module attributes {stable_mosaic.version = 11 : i64} {
  func.func @_fcnn_kernel(%arg0: i32, %arg1: memref<24x128xf32, #tpu.memory_space<vmem>>, %arg2: memref<24x24xf32, #tpu.memory_space<vmem>>, %arg3: memref<24x1xf32, #tpu.memory_space<vmem>>, %arg4: memref<1x24xf32, #tpu.memory_space<vmem>>, %arg5: memref<1x1xf32, #tpu.memory_space<vmem>>, %arg6: memref<1x128xf32, #tpu.memory_space<vmem>>) attributes {dimension_semantics = [#tpu.dimension_semantics<parallel>], iteration_bounds = array<i64: 1>, scalar_prefetch = 0 : i64, scratch_operands = 0 : i64, tpu.core_type = #tpu.core_type<tc>, window_params = [{transform_indices = @transform_0, window_bounds = array<i64: 24, 128>}, {pipeline_mode = #tpu.pipeline_mode<synchronous>, transform_indices = @transform_1, window_bounds = array<i64: 24, 24>}, {pipeline_mode = #tpu.pipeline_mode<synchronous>, transform_indices = @transform_2, window_bounds = array<i64: 24, 1>}, {pipeline_mode = #tpu.pipeline_mode<synchronous>, transform_indices = @transform_3, window_bounds = array<i64: 1, 24>}, {pipeline_mode = #tpu.pipeline_mode<synchronous>, transform_indices = @transform_4, window_bounds = array<i64: 1, 1>}, {transform_indices = @transform_5, window_bounds = array<i64: 1, 128>}]} {
    %c0 = arith.constant 0 : index
    %c0_0 = arith.constant 0 : index
    %0 = vector.load %arg1[%c0, %c0_0] : memref<24x128xf32, #tpu.memory_space<vmem>>, vector<24x128xf32>
    %c0_1 = arith.constant 0 : index
    %c0_2 = arith.constant 0 : index
    %1 = vector.load %arg2[%c0_1, %c0_2] : memref<24x24xf32, #tpu.memory_space<vmem>>, vector<24x24xf32>
    %cst = arith.constant dense<0.000000e+00> : vector<24x128xf32>
    %2 = tpu.matmul %1, %0, %cst {dimension_numbers = #tpu.dot_dimension_numbers<[1], [0], [0], [1], [0, 0, 1, 1], [], []>} : vector<24x24xf32>, vector<24x128xf32>, vector<24x128xf32> -> vector<24x128xf32>
    %c0_3 = arith.constant 0 : index
    %c0_4 = arith.constant 0 : index
    %3 = vector.load %arg3[%c0_3, %c0_4] : memref<24x1xf32, #tpu.memory_space<vmem>>, vector<24x1xf32>
    %4 = vector.broadcast %3 : vector<24x1xf32> to vector<24x128xf32>
    %5 = arith.addf %2, %4 : vector<24x128xf32>
    %cst_5 = arith.constant 0.000000e+00 : f32
    %6 = vector.broadcast %cst_5 : f32 to vector<24x128xf32>
    %7 = arith.maximumf %5, %6 : vector<24x128xf32>
    %c0_6 = arith.constant 0 : index
    %c0_7 = arith.constant 0 : index
    %8 = vector.load %arg4[%c0_6, %c0_7] : memref<1x24xf32, #tpu.memory_space<vmem>>, vector<1x24xf32>
    %cst_8 = arith.constant dense<0.000000e+00> : vector<1x128xf32>
    %9 = tpu.matmul %8, %7, %cst_8 {dimension_numbers = #tpu.dot_dimension_numbers<[1], [0], [0], [1], [0, 0, 1, 1], [], []>} : vector<1x24xf32>, vector<24x128xf32>, vector<1x128xf32> -> vector<1x128xf32>
    %c0_9 = arith.constant 0 : index
    %c0_10 = arith.constant 0 : index
    %10 = vector.load %arg5[%c0_9, %c0_10] : memref<1x1xf32, #tpu.memory_space<vmem>>, vector<1x1xf32>
    %11 = vector.broadcast %10 : vector<1x1xf32> to vector<1x128xf32>
    %12 = arith.addf %9, %11 : vector<1x128xf32>
    %c0_11 = arith.constant 0 : index
    %c0_12 = arith.constant 0 : index
    %13 = vector.load %arg6[%c0_11, %c0_12] : memref<1x128xf32, #tpu.memory_space<vmem>>, vector<1x128xf32>
    tpu.vector_store %arg6[%c0_11, %c0_12], %12 {strides = array<i32>} : memref<1x128xf32, #tpu.memory_space<vmem>>, vector<1x128xf32>,
    return
  }
  func.func @transform_0(%arg0: i32) -> (i32, i32) {
    %c0_i32 = arith.constant 0 : i32
    %c0_i32_0 = arith.constant 0 : i32
    return %c0_i32, %arg0 : i32, i32
  }
  func.func @transform_1(%arg0: i32) -> (i32, i32) {
    %c0_i32 = arith.constant 0 : i32
    %c0_i32_0 = arith.constant 0 : i32
    %c0_i32_1 = arith.constant 0 : i32
    return %c0_i32, %c0_i32_0 : i32, i32
  }
  func.func @transform_2(%arg0: i32) -> (i32, i32) {
    %c0_i32 = arith.constant 0 : i32
    %c0_i32_0 = arith.constant 0 : i32
    %c0_i32_1 = arith.constant 0 : i32
    return %c0_i32, %c0_i32_0 : i32, i32
  }
  func.func @transform_3(%arg0: i32) -> (i32, i32) {
    %c0_i32 = arith.constant 0 : i32
    %c0_i32_0 = arith.constant 0 : i32
    %c0_i32_1 = arith.constant 0 : i32
    return %c0_i32, %c0_i32_0 : i32, i32
  }
  func.func @transform_4(%arg0: i32) -> (i32, i32) {
    %c0_i32 = arith.constant 0 : i32
    %c0_i32_0 = arith.constant 0 : i32
    %c0_i32_1 = arith.constant 0 : i32
    return %c0_i32, %c0_i32_0 : i32, i32
  }
  func.func @transform_5(%arg0: i32) -> (i32, i32) {
    %c0_i32 = arith.constant 0 : i32
    %c0_i32_0 = arith.constant 0 : i32
    return %c0_i32, %arg0 : i32, i32
  }
}

</mosaic_0001>

<bundles_post_ra>
// kernel: tpu_custom_call.1
= control target key start
LH: loop header
LB: loop body
LE: loop exit
PB: predicated region body
PF: predicated region fallthrough
CT: control target
= control target key end

     0   :  { %s450_s0 = inlined_call_operand.vmem [shape: f32[24,128], index: 0, kind: input, shape index: {}]   ;;  %s451_s1 = inlined_call_operand.hbm [shape: f32[24,24], index: 1, kind: input, shape index: {}]   ;;  %s452_s2 = inlined_call_operand.vmem [shape: f32[24,1], index: 2, kind: input, shape index: {}]   ;;  %s453_s3 = inlined_call_operand.vmem [shape: f32[1,24], index: 3, kind: input, shape index: {}]   ;;  %s454_s4 = inlined_call_operand.<no memory space> [shape: f32[1,1], index: 4, kind: input, shape index: {}]   ;;  %s455_s5 = inlined_call_operand.hbm [shape: f32[1,128], index: 5, kind: output, shape index: {}]  }
   0x1   :  { %v10_v0 = vstv %s454_s4 }
   0x2   :  { %11 = vst [vmem:[#allocation2] sm:$0x1] %v10_v0 }
   0x3   :  { %12 = vsyncpa [#allocation4], 0 }
   0x4   :  { %13 = vsyncpa [#allocation5], 0  ;;  %s356_s20 = smov [#allocation3]   ;;  %s308_s24 = scalar_lea.hbm %s451_s1, 384 }
   0x5   :  { %s21_s21 = sshll.u32 %s356_s20, 4  ;;  %p309_p0 = scmp.ne.s32.totalorder %s451_s1, %s308_s24  ;;  %s22_s21 = int_to_ptr.vmem [resolvable:$true] %s21_s21 }
   0x6   :  { %p312_p1 = scmp.lt.u32.totalorder %s308_s24, %s451_s1 }
   0x8   :  { %p314_p2 = pnand %p312_p1, %p309_p0 }
   0xa   :  { %317 = shalt.err (!%p314_p2)
}
   0xb   :  { %s318_s4 = scalar_lea.vmem %s22_s21, 384  ;;  %p323_p4 = scmp.lt.s32.totalorder %s22_s21, %s22_s21 }
   0xc   :  { %p319_p3 = scmp.ne.s32.totalorder %s22_s21, %s318_s4  ;;  %p324_p5 = scmp.lt.s32.totalorder %s318_s4, %s318_s4 }
   0xe   :  { %p325_p6 = por %p324_p5, %p323_p4 }
  0x10   :  { %p326_p7 = pnand %p325_p6, %p319_p3 }
  0x12   :  { %329 = shalt.err (!%p326_p7)
}
  0x13   :  { %s357_s29 = smov 128   ;;  %s358_s30 = smov 8  }
  0x14   :  { %27 = dma.hbm_to_vmem [thread:$0]  %s451_s1, 384, %s22_s21, [#allocation4], %s357_s29, %s357_s29, %s358_s30  }
  0x15   :  { %352 = dma.done.wait [#allocation4], 384  }
  0x16   :  { %353 = vsyncadd [#allocation4], 4294966912  ;;  %v359_v1 = vmov 0.0|0.0   ;;  %vm360_vm0 = vmmov 0   ;;  %v361_v2 = vmov 0.0   ;;  %v362_v3 = vmov 0  }
  0x17   :  { %292 = vmatprep.subr.bf16.mxu0 %v359_v1  ;;  %274 = vmatprep.mubr.msk.f32.mxu0 %vm360_vm0, %v361_v2  ;;  %v37_v4 = vld [vmem:[%s450_s0] sm:$0xff]  ;;  %v38_v5 = vld [vmem:[%s450_s0 + $0x8] sm:$0xff]  ;;  %v45_v8 = vld [vmem:[%s452_s2 + $0x10] sm:$0xff]  ;;  %vm61_vm1 = vcmask 195584   ;;  %v161_v32 = vlaneseq  ;;  %s363_s19 = smov [#allocation6]  }
  0x18   :  { %306 = vset.pattern.permute.xlu0 %v362_v3  ;;  %307 = vset.pattern.permute.xlu1 %v362_v3  ;;  %v293_v6 = vpack.c.bf16 %v38_v5, %v37_v4  ;;  %v43_v7 = vld [vmem:[%s452_s2] sm:$0xff]  ;;  %v39_v9 = vld [vmem:[%s450_s0 + $0x10] sm:$0xff]  ;;  %v44_v10 = vld [vmem:[%s452_s2 + $0x8] sm:$0xff]  ;;  %s245_s20 = sshll.u32 %s363_s19, 4  ;;  %s246_s20 = int_to_ptr.vmem [resolvable:$true] %s245_s20 }
  0x19   :  { %295 = vmatprep.subr.bf16.mxu1 %v359_v1  ;;  %289 = vmatprep.mubr.msk.f32.mxu1 %vm360_vm0, %v361_v2  ;;  %v40_v11 = vld [vmem:[#allocation3] sm:$0xff]  ;;  %v155_v12 = vld [vmem:[#allocation2] sm:$0x1]  ;;  %v41_v13 = vld [vmem:[#allocation3 + $0x8] sm:$0xff]  ;;  %v162_v33 = vshrl.u32 %v161_v32, 7  ;;  %s330_s21 = scalar_lea.vmem %s246_s20, 16  ;;  %p335_p9 = scmp.lt.s32.totalorder %s246_s20, %s246_s20 }
  0x1a   :  { %294 = vmatpush3.bf16.msra.mxu0 %v293_v6  ;;  %48 = vperm.xlu0 %306, %v43_v7   ;;  %v42_v14 = vld [vmem:[#allocation3 + $0x10] sm:$0xff]  ;;  %v154_v31 = vld [vmem:[%s453_s3] sm:$0x1]  ;;  %p331_p8 = scmp.ne.s32.totalorder %s246_s20, %s330_s21  ;;  %s334_s22 = scalar_lea.vmem %s246_s20, 32 }
  0x1b   :  { %272 = vmatprep.subr.mxu0 %v361_v2  ;;  %58 = vperm.xlu1 %307, %v45_v8   ;;  %v163_v34 = vsub.s32 0, %v162_v33  ;;  %p336_p10 = scmp.lt.s32.totalorder %s334_s22, %s330_s21 }
  0x1d   :  { %p337_p11 = por %p336_p10, %p335_p9 }
  0x1e   :  { %273 = vmatpush3.msra.mxu0 %v39_v9  ;;  %53 = vperm.xlu0 %306, %v44_v10  }
  0x1f   :  { %275 = vmatmul.mubr.msk.f32.vlgmr.msra.gmra.mrb[0].mxu0 %vm61_vm1, %v40_v11  ;;  %158 = vperm.xlu1 %307, %v155_v12   ;;  %p338_p12 = pnand %p337_p11, %p331_p8 }
  0x20   :  { %277 = vmatprep.mubr.msk.f32.mxu0 %vm360_vm0, %v361_v2 }
  0x23   :  { %278 = vmatmul.mubr.msk.f32.gmra.mrb[2].mxu0 %vm61_vm1, %v41_v13 }
  0x24   :  { %280 = vmatprep.mubr.msk.f32.mxu0 %vm360_vm0, %v361_v2 }
  0x27   :  { %281 = vmatmul.mubr.msk.f32.gmra.mrb[4].mxu0 %vm61_vm1, %v42_v14 }
  0x99   :  { %v49_v15 = vpop.permute.xlu0 %48 }
  0x9a   :  { %v59_v25 = vpop.permute.xlu1 %58 }
  0x9d   :  { %v54_v19 = vpop.permute.xlu0 %53 }
  0x9e   :  { %v159_v35 = vpop.permute.xlu1 %158 }
  0x9f   :  { %v164_v36 = vrot.slane %v159_v35, %v163_v34 }
  0xf2   :  { %v137_v16 = vpop.f32.mrb[0].mxu0 }
  0xf3   :  { %v276_v17 = vpop.f32.mrb[1].mxu0  ;;  %v138_v18 = vadd.f32 %v137_v16, %v49_v15 }
  0xf5   :  { %v151_v23 = vmax.f32 %v138_v18, 0.0 }
  0xf6   :  { %v142_v20 = vpop.f32.mrb[2].mxu0 }
  0xf7   :  { %v143_v21 = vadd.f32 %v142_v20, %v54_v19  ;;  %v279_v22 = vpop.f32.mrb[3].mxu0 }
  0xf9   :  { %v152_v24 = vmax.f32 %v143_v21, 0.0 }
  0xfa   :  { %v147_v26 = vpop.f32.mrb[4].mxu0 }
  0xfb   :  { %v148_v27 = vadd.f32 %v147_v26, %v59_v25  ;;  %v282_v28 = vpop.f32.mrb[5].mxu0  ;;  %v296_v29 = vpack.c.bf16 %v152_v24, %v151_v23 }
  0xfd   :  { %v153_v30 = vmax.f32 %v148_v27, 0.0  ;;  %297 = vmatpush3.bf16.msra.mxu1 %v296_v29 }
  0xfe   :  { %287 = vmatprep.subr.mxu1 %v361_v2 }
 0x101   :  { %288 = vmatpush3.msra.mxu1 %v153_v30 }
 0x102   :  { %290 = vmatmul.mubr.msk.f32.vlgmr.msra.gmra.mrb[0].mxu1 %vm61_vm1, %v154_v31 }
 0x1d5   :  { %v234_v37 = vpop.f32.mrb[0].mxu1 }
 0x1d6   :  { %v235_v38 = vadd.f32 %v234_v37, %v164_v36  ;;  %v291_v39 = vpop.f32.mrb[1].mxu1 }
 0x1d8   :  { %238 = vst [vmem:[#allocation6] sm:$0x1] %v235_v38 }
 0x1d9   :  { %341 = shalt.err (!%p338_p12)
}
 0x1da   :  { %s342_s24 = scalar_lea.hbm %s455_s5, 16 }
 0x1db   :  { %p343_p13 = scmp.ne.s32.totalorder %s455_s5, %s342_s24  ;;  %p346_p0 = scmp.lt.u32.totalorder %s342_s24, %s455_s5 }
 0x1dd   :  { %p348_p1 = pnand %p346_p0, %p343_p13 }
 0x1df   :  { %351 = shalt.err (!%p348_p1)
}
 0x1e0   :  { %248 = dma.vmem_to_hbm [thread:$0]  %s246_s20, 16, %s455_s5, [#allocation5]  }
 0x1e1   :  { %354 = dma.done.wait [#allocation5], 16  }
 0x1e2   :  { %355 = vsyncadd [#allocation5], 4294967280 }
 0x1e3   :  { %252 = vsyncpa [#allocation4], 1 }
 0x1e4   :  { %253 = vsyncpa [#allocation5], 1 }

</bundles_post_ra>
